<compile_context>
chip_gen: v6e
topology: v6e:2x2x1
jax: 0.10.0
libtpu: 0.0.40
codegen_flags: <defaults>
</compile_context>

<pallas_src>
import jax
import jax.numpy as jnp
from jax.experimental import pallas as pl
from jax.experimental.pallas import tpu as pltpu

_LN_EPS = 1e-5


# ----------------------------------------------------------------------------
# Kernel: fused 2x2 merge + LayerNorm(4C) + Linear(4C -> 2C, bias-free)
# ----------------------------------------------------------------------------
def _patch_merging_kernel(x_ref, w_ref, b_ref, o_ref):
    """
    x_ref : (th, 2, W/2, 2C)  th merged rows; dim1 = original row parity (dh);
            last dim = [dw=0 channels | dw=1 channels].
    w_ref : (2, 2C, 2C)  gamma-folded reduction weight; slab 0 multiplies the
            even-row half [x0 | x2], slab 1 the odd-row half [x1 | x3].
    b_ref : (1, 2C)  f32 bias = beta @ W^T.
    o_ref : (th * W/2, 2C)
    """
    th, _, hw, two_c = x_ref.shape
    four_c = 2 * two_c

    # Load the two row-parity halves separately (no lane-offset concat).
    xe = x_ref[:, 0, :, :].astype(jnp.float32)      # (th, hw, 2C)  [x0 | x2]
    xo = x_ref[:, 1, :, :].astype(jnp.float32)      # (th, hw, 2C)  [x1 | x3]

    # One-pass LayerNorm statistics over the merged 4C channels (f32).
    inv_n = 1.0 / four_c
    s = (jnp.sum(xe, axis=-1, keepdims=True)
         + jnp.sum(xo, axis=-1, keepdims=True))
    ss = (jnp.sum(xe * xe, axis=-1, keepdims=True)
          + jnp.sum(xo * xo, axis=-1, keepdims=True))
    mean = s * inv_n
    var = jnp.maximum(ss * inv_n - mean * mean, 0.0)
    rstd = jax.lax.rsqrt(var + _LN_EPS)
    shift = -mean * rstd                            # fused scale-and-shift

    mm_dtype = w_ref.dtype
    xne = (xe * rstd + shift).reshape(th * hw, two_c).astype(mm_dtype)
    xno = (xo * rstd + shift).reshape(th * hw, two_c).astype(mm_dtype)

    # Two K=2C MXU matmuls accumulating in f32 (gamma folded into w_ref,
    # beta folded into b_ref).
    y = jnp.dot(xne, w_ref[0], preferred_element_type=jnp.float32)
    y = y + jnp.dot(xno, w_ref[1], preferred_element_type=jnp.float32)
    o_ref[...] = (y + b_ref[...]).astype(o_ref.dtype)


# ----------------------------------------------------------------------------
# One-time parameter preparation (do this at load time, not per forward).
# ----------------------------------------------------------------------------
def prepare_patch_merging_params(weight, gamma, beta, *,
                                 matmul_dtype=jnp.bfloat16):
    """weight: (2C, 4C) PyTorch nn.Linear layout; gamma/beta: (4C,).

    Returns (w_folded, bias):
      w_folded : (2, 2C, 2C).  Rows = permute(gamma[:,None] * W^T) to the
                 kernel channel order [x0, x2 | x1, x3]; slab 0 is the
                 even-row half, slab 1 the odd-row half.  Cast to matmul_dtype
                 (bf16 default; pass jnp.float32 for parity-sensitive use).
      bias     : (1, 2C) f32 = beta @ W^T.
    """
    two_c, four_c = weight.shape
    c = four_c // 4
    assert four_c == 4 * c and two_c == 2 * c, (weight.shape,)

    # Kernel channel j corresponds to original channel perm[j].
    perm = jnp.concatenate([jnp.arange(0, c),
                            jnp.arange(2 * c, 3 * c),
                            jnp.arange(c, 2 * c),
                            jnp.arange(3 * c, 4 * c)])
    w_t = jnp.transpose(weight).astype(jnp.float32)                 # (4C, 2C)
    w_folded = (gamma.astype(jnp.float32)[:, None] * w_t)[perm, :]
    w_folded = w_folded.reshape(2, 2 * c, 2 * c).astype(matmul_dtype)
    bias = (beta.astype(jnp.float32) @ w_t).reshape(1, 2 * c)
    return w_folded, bias


# ----------------------------------------------------------------------------
# Tile sizing from an explicit VMEM budget.
# ----------------------------------------------------------------------------
def _tile_budget_tokens(c, x_isz, o_isz, w_isz, *, target_tokens,
                        vmem_budget_bytes):
    # Per merged token: double-buffered input/output tiles + f32 LN /
    # matmul intermediates.
    per_tok = (4 * c * x_isz * 2            # input tile, 2 buffers
               + 2 * c * o_isz * 2          # output tile, 2 buffers
               + 4 * c * 4 * 2              # f32 halves + normalized halves
               + 4 * c * w_isz              # matmul-dtype copies
               + 2 * c * 4)                 # f32 accumulator
    fixed = 2 * (4 * c * 2 * c * w_isz + 2 * c * 4)   # weight + bias, 2 bufs
    avail = max(vmem_budget_bytes - fixed, per_tok)
    return max(min(target_tokens, avail // per_tok), 1), per_tok, fixed


def _pick_rows_per_tile(rows, half_w, tokens_cap):
    """Merged rows per tile: divides `rows`, keeps (th*half_w, 2C) output
    blocks sublane-legal, fits `tokens_cap`, and prefers >=2 grid steps
    (v7x megacore) when that costs nothing."""
    divisors = [d for d in range(1, rows + 1) if rows % d == 0]
    legal = [d for d in divisors if (d * half_w) % 8 == 0 or d == rows]
    fitting = [d for d in legal if d * half_w <= max(tokens_cap, half_w)]
    if not fitting:
        return min(legal)          # may exceed budget; footprint recomputed later
    best = max(fitting)
    if rows // best < 2:
        multi = [d for d in fitting if rows // d >= 2]
        if multi and 2 * max(multi) >= best:
            best = max(multi)
    return best


# ----------------------------------------------------------------------------
# Forward pass
# ----------------------------------------------------------------------------
def patch_merging(x, input_resolution, w_folded, bias, *, out_dtype=None,
                  target_tokens=4096, vmem_budget_bytes=24 * 1024 * 1024,
                  vmem_limit_bytes=None):
    """x: (B, H*W, C) -> (B, H/2*W/2, 2C). w_folded/bias from prepare_*()."""
    h, w = input_resolution
    b, l, c = x.shape
    assert l == h * w, "input feature has wrong size"
    assert h % 2 == 0 and w % 2 == 0, f"x size ({h}*{w}) are not even."
    assert w_folded.shape == (2, 2 * c, 2 * c), (w_folded.shape, c)
    out_dtype = x.dtype if out_dtype is None else out_dtype

    half_h, half_w = h // 2, w // 2
    rows = b * half_h                       # batch folded into the row axis
    m = rows * half_w                       # total merged tokens
    two_c = 2 * c

    # Zero-copy view:
    #   xr[r, dh, ww, dw*C:(dw+1)*C] == x[r//half_h, 2*(r%half_h)+dh, 2*ww+dw, :]
    xr = x.reshape(rows, 2, half_w, two_c)

    x_isz = jnp.dtype(x.dtype).itemsize
    o_isz = jnp.dtype(out_dtype).itemsize
    w_isz = jnp.dtype(w_folded.dtype).itemsize
    tokens_cap, per_tok, fixed = _tile_budget_tokens(
        c, x_isz, o_isz, w_isz, target_tokens=target_tokens,
        vmem_budget_bytes=vmem_budget_bytes)
    th = _pick_rows_per_tile(rows, half_w, tokens_cap)
    tm = th * half_w
    grid = (rows // th,)

    if vmem_limit_bytes is None:
        footprint = tm * per_tok + fixed
        vmem_limit_bytes = int(min(48 << 20, max(32 << 20, footprint * 3 // 2)))

    cost = pl.CostEstimate(
        flops=2 * m * (4 * c) * (2 * c),
        transcendentals=m,
        bytes_accessed=(x.size * x_isz
                        + w_folded.size * w_isz
                        + bias.size * jnp.dtype(bias.dtype).itemsize
                        + m * two_c * o_isz),
    )

    out2d = pl.pallas_call(
        _patch_merging_kernel,
        out_shape=jax.ShapeDtypeStruct((m, two_c), out_dtype),
        grid_spec=pltpu.PrefetchScalarGridSpec(
            num_scalar_prefetch=0,
            grid=grid,
            in_specs=[
                # One contiguous slab of 2*th original image rows per step.
                pl.BlockSpec((th, 2, half_w, two_c), lambda i: (i, 0, 0, 0)),
                pl.BlockSpec((2, two_c, two_c), lambda i: (0, 0, 0)),
                pl.BlockSpec((1, two_c), lambda i: (0, 0)),
            ],
            out_specs=pl.BlockSpec((tm, two_c), lambda i: (i, 0)),
        ),
        compiler_params=pltpu.CompilerParams(
            dimension_semantics=("parallel",),
            vmem_limit_bytes=vmem_limit_bytes,
        ),
        cost_estimate=cost,
    )(xr, w_folded, bias)

    # Free reshape in HBM back to the module's (B, H/2*W/2, 2C) layout.
    return out2d.reshape(b, half_h * half_w, two_c)


# ----------------------------------------------------------------------------
# Pure-JAX reference mirroring the PyTorch forward.
# ----------------------------------------------------------------------------
def _reference(x, input_resolution, weight, gamma, beta):
    h, w = input_resolution
    b, l, c = x.shape
    xg = x.reshape(b, h, w, c)
    x0 = xg[:, 0::2, 0::2, :]
    x1 = xg[:, 1::2, 0::2, :]
    x2 = xg[:, 0::2, 1::2, :]
    x3 = xg[:, 1::2, 1::2, :]
    xm = jnp.concatenate([x0, x1, x2, x3], axis=-1).reshape(b, -1, 4 * c)
    mean = jnp.mean(xm, axis=-1, keepdims=True)
    var = jnp.mean((xm - mean) ** 2, axis=-1, keepdims=True)
    xn = (xm - mean) / jnp.sqrt(var + _LN_EPS) * gamma + beta
    return xn @ weight.T


if __name__ == "__main__":
    # Small, lane-dense config: (16,16) resolution, dim=64 -> x: (2, 256, 64),
    # LN width 4C=256, output width 2C=128.
    B, H, W, C = 2, 16, 16, 64
    key = jax.random.PRNGKey(0)
    kx, kw, kg, kb = jax.random.split(key, 4)

    x = jax.random.normal(kx, (B, H * W, C), dtype=jnp.float32)
    weight = jax.random.normal(kw, (2 * C, 4 * C), dtype=jnp.float32) * 0.1
    gamma = 1.0 + 0.05 * jax.random.normal(kg, (4 * C,), dtype=jnp.float32)
    beta = 0.05 * jax.random.normal(kb, (4 * C,), dtype=jnp.float32)

    fwd = jax.jit(patch_merging, static_argnames=("input_resolution",
                                                  "out_dtype"))

    # 1) f32 activations + f32 matmul operands: tight-ish numerical check.
    w_f32, b_f32 = prepare_patch_merging_params(
        weight, gamma, beta, matmul_dtype=jnp.float32)
    ref = _reference(x, (H, W), weight, gamma, beta)
    out = jax.block_until_ready(fwd(x, (H, W), w_f32, b_f32))
    assert out.shape == (B, (H // 2) * (W // 2), 2 * C), out.shape
    assert jnp.allclose(out, ref, atol=2e-2, rtol=2e-2), \
        float(jnp.max(jnp.abs(out - ref)))

    # 2) bf16 activations in / bf16 out + bf16 matmul operands (perf config):
    #    LN / accumulation stay f32; looser tolerance.
    w_bf, b_bf = prepare_patch_merging_params(weight, gamma, beta,
                                              matmul_dtype=jnp.bfloat16)
    x_bf = x.astype(jnp.bfloat16)
    ref_bf = _reference(x_bf.astype(jnp.float32), (H, W), weight, gamma, beta)
    out_bf = jax.block_until_ready(fwd(x_bf, (H, W), w_bf, b_bf))
    assert out_bf.shape == (B, (H // 2) * (W // 2), 2 * C), out_bf.shape
    assert jnp.allclose(out_bf.astype(jnp.float32), ref_bf,
                        atol=1e-1, rtol=5e-2), \
        float(jnp.max(jnp.abs(out_bf.astype(jnp.float32) - ref_bf)))

    print("KERNEL_OK")
</pallas_src>

<mosaic_0001>
module attributes {stable_mosaic.version = 11 : i64} {
  func.func @_patch_merging_kernel(%arg0: i32, %arg1: memref<8x2x8x128xf32, #tpu.memory_space<vmem>>, %arg2: memref<2x128x128xf32, #tpu.memory_space<vmem>>, %arg3: memref<1x128xf32, #tpu.memory_space<vmem>>, %arg4: memref<64x128xf32, #tpu.memory_space<vmem>>) attributes {dimension_semantics = [#tpu.dimension_semantics<parallel>], iteration_bounds = array<i64: 2>, scalar_prefetch = 0 : i64, scratch_operands = 0 : i64, tpu.core_type = #tpu.core_type<tc>, window_params = [{transform_indices = @transform_0, window_bounds = array<i64: 8, 2, 8, 128>}, {pipeline_mode = #tpu.pipeline_mode<synchronous>, transform_indices = @transform_1, window_bounds = array<i64: 2, 128, 128>}, {pipeline_mode = #tpu.pipeline_mode<synchronous>, transform_indices = @transform_2, window_bounds = array<i64: 1, 128>}, {transform_indices = @transform_3, window_bounds = array<i64: 64, 128>}]} {
    %c0 = arith.constant 0 : index
    %c0_0 = arith.constant 0 : index
    %c0_1 = arith.constant 0 : index
    %c0_2 = arith.constant 0 : index
    %0 = vector.load %arg1[%c0, %c0_0, %c0_1, %c0_2] : memref<8x2x8x128xf32, #tpu.memory_space<vmem>>, vector<8x1x8x128xf32>
    %1 = vector.shape_cast %0 : vector<8x1x8x128xf32> to vector<8x8x128xf32>
    %c0_3 = arith.constant 0 : index
    %c1 = arith.constant 1 : index
    %c0_4 = arith.constant 0 : index
    %c0_5 = arith.constant 0 : index
    %2 = vector.load %arg1[%c0_3, %c1, %c0_4, %c0_5] : memref<8x2x8x128xf32, #tpu.memory_space<vmem>>, vector<8x1x8x128xf32>
    %3 = vector.shape_cast %2 : vector<8x1x8x128xf32> to vector<8x8x128xf32>
    %cst = arith.constant dense<0.000000e+00> : vector<8x8xf32>
    %4 = vector.multi_reduction <add>, %1, %cst [2] : vector<8x8x128xf32> to vector<8x8xf32>
    %5 = vector.shape_cast %4 : vector<8x8xf32> to vector<8x8x1xf32>
    %cst_6 = arith.constant dense<0.000000e+00> : vector<8x8xf32>
    %6 = vector.multi_reduction <add>, %3, %cst_6 [2] : vector<8x8x128xf32> to vector<8x8xf32>
    %7 = vector.shape_cast %6 : vector<8x8xf32> to vector<8x8x1xf32>
    %8 = arith.addf %5, %7 : vector<8x8x1xf32>
    %9 = arith.mulf %1, %1 : vector<8x8x128xf32>
    %cst_7 = arith.constant dense<0.000000e+00> : vector<8x8xf32>
    %10 = vector.multi_reduction <add>, %9, %cst_7 [2] : vector<8x8x128xf32> to vector<8x8xf32>
    %11 = vector.shape_cast %10 : vector<8x8xf32> to vector<8x8x1xf32>
    %12 = arith.mulf %3, %3 : vector<8x8x128xf32>
    %cst_8 = arith.constant dense<0.000000e+00> : vector<8x8xf32>
    %13 = vector.multi_reduction <add>, %12, %cst_8 [2] : vector<8x8x128xf32> to vector<8x8xf32>
    %14 = vector.shape_cast %13 : vector<8x8xf32> to vector<8x8x1xf32>
    %15 = arith.addf %11, %14 : vector<8x8x1xf32>
    %cst_9 = arith.constant 3.906250e-03 : f32
    %16 = vector.broadcast %cst_9 : f32 to vector<8x8x1xf32>
    %17 = arith.mulf %8, %16 : vector<8x8x1xf32>
    %cst_10 = arith.constant 3.906250e-03 : f32
    %18 = vector.broadcast %cst_10 : f32 to vector<8x8x1xf32>
    %19 = arith.mulf %15, %18 : vector<8x8x1xf32>
    %20 = arith.mulf %17, %17 : vector<8x8x1xf32>
    %21 = arith.subf %19, %20 : vector<8x8x1xf32>
    %cst_11 = arith.constant 0.000000e+00 : f32
    %22 = vector.broadcast %cst_11 : f32 to vector<8x8x1xf32>
    %23 = arith.maximumf %21, %22 : vector<8x8x1xf32>
    %cst_12 = arith.constant 9.99999974E-6 : f32
    %24 = vector.broadcast %cst_12 : f32 to vector<8x8x1xf32>
    %25 = arith.addf %23, %24 : vector<8x8x1xf32>
    %26 = math.rsqrt %25 : vector<8x8x1xf32>
    %cst_13 = arith.constant 0.000000e+00 : f32
    %27 = vector.broadcast %cst_13 : f32 to vector<8x8x1xf32>
    %28 = arith.subf %27, %17 : vector<8x8x1xf32>
    %29 = arith.mulf %28, %26 : vector<8x8x1xf32>
    %30 = vector.broadcast %26 : vector<8x8x1xf32> to vector<8x8x128xf32>
    %31 = arith.mulf %1, %30 : vector<8x8x128xf32>
    %32 = vector.broadcast %29 : vector<8x8x1xf32> to vector<8x8x128xf32>
    %33 = arith.addf %31, %32 : vector<8x8x128xf32>
    %34 = vector.shape_cast %33 : vector<8x8x128xf32> to vector<64x128xf32>
    %35 = vector.broadcast %26 : vector<8x8x1xf32> to vector<8x8x128xf32>
    %36 = arith.mulf %3, %35 : vector<8x8x128xf32>
    %37 = vector.broadcast %29 : vector<8x8x1xf32> to vector<8x8x128xf32>
    %38 = arith.addf %36, %37 : vector<8x8x128xf32>
    %39 = vector.shape_cast %38 : vector<8x8x128xf32> to vector<64x128xf32>
    %c0_14 = arith.constant 0 : index
    %c0_15 = arith.constant 0 : index
    %c0_16 = arith.constant 0 : index
    %40 = vector.load %arg2[%c0_14, %c0_15, %c0_16] : memref<2x128x128xf32, #tpu.memory_space<vmem>>, vector<1x128x128xf32>
    %41 = vector.shape_cast %40 : vector<1x128x128xf32> to vector<128x128xf32>
    %cst_17 = arith.constant dense<0.000000e+00> : vector<64x128xf32>
    %42 = tpu.matmul %34, %41, %cst_17 {dimension_numbers = #tpu.dot_dimension_numbers<[1], [0], [0], [1], [0, 0, 1, 1], [], []>} : vector<64x128xf32>, vector<128x128xf32>, vector<64x128xf32> -> vector<64x128xf32>
    %c1_18 = arith.constant 1 : index
    %c0_19 = arith.constant 0 : index
    %c0_20 = arith.constant 0 : index
    %43 = vector.load %arg2[%c1_18, %c0_19, %c0_20] : memref<2x128x128xf32, #tpu.memory_space<vmem>>, vector<1x128x128xf32>
    %44 = vector.shape_cast %43 : vector<1x128x128xf32> to vector<128x128xf32>
    %cst_21 = arith.constant dense<0.000000e+00> : vector<64x128xf32>
    %45 = tpu.matmul %39, %44, %cst_21 {dimension_numbers = #tpu.dot_dimension_numbers<[1], [0], [0], [1], [0, 0, 1, 1], [], []>} : vector<64x128xf32>, vector<128x128xf32>, vector<64x128xf32> -> vector<64x128xf32>
    %46 = arith.addf %42, %45 : vector<64x128xf32>
    %c0_22 = arith.constant 0 : index
    %c0_23 = arith.constant 0 : index
    %47 = vector.load %arg3[%c0_22, %c0_23] : memref<1x128xf32, #tpu.memory_space<vmem>>, vector<1x128xf32>
    %48 = vector.broadcast %47 : vector<1x128xf32> to vector<64x128xf32>
    %49 = arith.addf %46, %48 : vector<64x128xf32>
    %c0_24 = arith.constant 0 : index
    %c0_25 = arith.constant 0 : index
    %50 = vector.load %arg4[%c0_24, %c0_25] : memref<64x128xf32, #tpu.memory_space<vmem>>, vector<64x128xf32>
    tpu.vector_store %arg4[%c0_24, %c0_25], %49 {strides = array<i32>} : memref<64x128xf32, #tpu.memory_space<vmem>>, vector<64x128xf32>,
    return
  }
  func.func @transform_0(%arg0: i32) -> (i32, i32, i32, i32) {
    %c0_i32 = arith.constant 0 : i32
    %c0_i32_0 = arith.constant 0 : i32
    %c0_i32_1 = arith.constant 0 : i32
    %c0_i32_2 = arith.constant 0 : i32
    return %arg0, %c0_i32, %c0_i32_0, %c0_i32_1 : i32, i32, i32, i32
  }
  func.func @transform_1(%arg0: i32) -> (i32, i32, i32) {
    %c0_i32 = arith.constant 0 : i32
    %c0_i32_0 = arith.constant 0 : i32
    %c0_i32_1 = arith.constant 0 : i32
    %c0_i32_2 = arith.constant 0 : i32
    return %c0_i32, %c0_i32_0, %c0_i32_1 : i32, i32, i32
  }
  func.func @transform_2(%arg0: i32) -> (i32, i32) {
    %c0_i32 = arith.constant 0 : i32
    %c0_i32_0 = arith.constant 0 : i32
    %c0_i32_1 = arith.constant 0 : i32
    return %c0_i32, %c0_i32_0 : i32, i32
  }
  func.func @transform_3(%arg0: i32) -> (i32, i32) {
    %c0_i32 = arith.constant 0 : i32
    %c0_i32_0 = arith.constant 0 : i32
    return %arg0, %c0_i32 : i32, i32
  }
}

</mosaic_0001>

<bundles_post_ra>
// kernel: patch_merging.1
= control target key start
LH: loop header
LB: loop body
LE: loop exit
PB: predicated region body
PF: predicated region fallthrough
CT: control target
= control target key end

     0   :  { %8 = vsyncpa [#allocation3], 0  ;;  %s1401_s0 = inlined_call_operand.vmem [shape: f32[16,2,8,128], index: 0, kind: input, shape index: {}]   ;;  %s1402_s1 = inlined_call_operand.vmem [shape: f32[2,128,128], index: 1, kind: input, shape index: {}]   ;;  %s1403_s2 = inlined_call_operand.vmem [shape: f32[1,128], index: 2, kind: input, shape index: {}]   ;;  %s1404_s3 = inlined_call_operand.hbm [shape: f32[128,128], index: 3, kind: output, shape index: {}]  }
   0x1   :  { %10 = vsyncpa [#allocation3 + $0x1], 0  ;;  %s1052_s12 = smov 0   ;;  %s1054_s13 = smov 0  }
   0x2   :  { %s1056_s14 = smov 0   ;;  %s1058_s15 = smov 0  }
   0x3 LB: > { %s1073_s16 = sadd.s32 4294967295, %s1027_s15   ;;  %s734_s17 = sadd.s32 4294967294, %s1027_s15   ;;  %s1027_s15 = sphi %s1058_s15, %s1410_s15   ;;  %s1023_s14 = sphi %s1056_s14, %s1409_s14   ;;  %s1019_s13 = sphi %s1054_s13, %s1408_s13   ;;  %s1015_s12 = sphi %s1052_s12, %s1407_s12  }
   0x4   : > { %s1077_s18 = sadd.s32 1, %s1027_s15   ;;  %s91_s19 = sadd.s32 1, %s1023_s14 }
   0x5   : > { %s88_s20 = ssub.s32 %s1027_s15, %s1077_s18  ;;  %p101_p0 = scmp.ne.s32.totalorder %s1023_s14, %s1019_s13 }
   0x6   : > { %p89_p1 = scmp.eq.s32.totalorder %s88_s20, 0  ;;  %p102_p2 = scmp.eq.s32.totalorder %s1073_s16, 1 }
   0x7   : > { %p107_p3 = scmp.ne.s32.totalorder %s1019_s13, %s1015_s12  ;;  %p108_p4 = scmp.eq.s32.totalorder %s734_s17, 1 }
   0x8   : > { %s1088_s21 = scalar_select %p89_p1, %s1023_s14, %s91_s19  }
   0x9   : > { %p1090_p5 = por %p102_p2, %p101_p0  ;;  %p1094_p6 = por %p108_p4, %p107_p3 }
   0xa   : > { %p737_p7 = scmp.ge.s32.totalorder %s1027_s15, 1  ;;  %p142_p8 = scmp.lt.s32.totalorder %s1027_s15, 3 }
   0xc   : > { %p143_p9 = pnand %p737_p7, %p142_p8 }
   0xd   : > { %s739_s24 = sshll.u32 (!%p143_p9), %s1073_s16, 3  ;;  %s164_s20 = sand.u32 (!%p143_p9), 1, %s1019_s13  }
   0xe   : > { %146 = sbr.rel (%p143_p9) target bundleno = 463 (0x1cf), region = 32  ;;  %p168_p10 = scmp.lt.s32.totalorder (!%p143_p9), %s739_s24, 15 }
   0xf   : > { %s773_s29 = sshll.u32 (!%p143_p9), %s1073_s16, 10  ;;  %s1361_s16 = scalar_lea.sflag (!%p143_p9), [#allocation3], %s164_s20 }
  0x10   : > { %s1353_s6 = scalar_lea.hbm (!%p143_p9), %s1404_s3, %s773_s29  ;;  %s1029_s7 = smov (!%p143_p9), [#allocation2]  }
  0x11   : > { %s971_s8 = sshll.u32 (!%p143_p9), %s1029_s7, 4  ;;  %s972_s8 = int_to_ptr.vmem [resolvable:$false] %s971_s8 }
  0x12   : > { %s973_s9 = scalar_lea.vmem (!%p143_p9), %s972_s8, 2048 }
  0x13   : > { %s1412_s24 = smov (!%p168_p10, %s739_s24), 15  ;;  %v765_v12 = vld [vmem:[%s1402_s1 + $0xf8] sm:$0xff]  ;;  %v764_v16 = vld [vmem:[%s1402_s1 + $0xf0] sm:$0xff]  ;;  %v763_v18 = vld [vmem:[%s1402_s1 + $0xe8] sm:$0xff] }
  0x14   : > { %s772_s25 = sshll.u32 %s1412_s24, 4  ;;  %v407_v13 = vld [vmem:[%s1402_s1 + $0x78] sm:$0xff]  ;;  %822 = vmatprep.subr.mxu0 %v765_v12  ;;  %v406_v17 = vld [vmem:[%s1402_s1 + $0x70] sm:$0xff]  ;;  %v405_v19 = vld [vmem:[%s1402_s1 + $0x68] sm:$0xff]  ;;  %s738_s24 = sshll.u32 %s164_s20, 6 }
  0x15   : > { %s1104_s28 = scalar_lea.vmem %s1401_s0, %s772_s25  ;;  %866 = vmatprep.subr.mxu1 %v407_v13  ;;  %823 = vmatpush3.msra.mxu0 %v765_v12  ;;  %v762_v22 = vld [vmem:[%s1402_s1 + $0xe0] sm:$0xff]  ;;  %v761_v24 = vld [vmem:[%s1402_s1 + $0xd8] sm:$0xff]  ;;  %v760_v28 = vld [vmem:[%s1402_s1 + $0xd0] sm:$0xff]  ;;  %s1340_s27 = scalar_lea.vmem [#allocation2], %s738_s24 }
  0x16   : > { %v1107_v0 = vld [vmem:[%s1104_s28 + $0x10] sm:$0xff]  ;;  %v1110_v1 = vld [vmem:[%s1104_s28] sm:$0xff]  ;;  %v1115_v2 = vld [vmem:[%s1104_s28 + $0x18] sm:$0xff]  ;;  %867 = vmatpush3.msra.mxu1 %v407_v13  ;;  %824 = vmatprep.subr.mxu0 %v764_v16  ;;  %s672_s30 = sshll.u32 %s1340_s27, 4  ;;  %s1355_s30 = int_to_ptr.vmem [resolvable:$true] %s672_s30 }
  0x17   : > { %194 = vadd.xlane.f32.xlu1 %v1107_v0  ;;  %192 = vadd.xlane.f32.xlu0 %v1110_v1  ;;  %v1118_v3 = vld [vmem:[%s1104_s28 + $0x8] sm:$0xff]  ;;  %v232_v5 = vmul.f32 %v1110_v1, %v1110_v1  ;;  %v257_v6 = vmul.f32 %v1115_v2, %v1115_v2  ;;  %v233_v7 = vmul.f32 %v1107_v0, %v1107_v0  ;;  %v1134_v9 = vld [vmem:[%s1104_s28 + $0x20] sm:$0xff]  ;;  %v1139_v10 = vld [vmem:[%s1104_s28 + $0x38] sm:$0xff]  ;;  %p974_p0 = scmp.lt.s32.totalorder %s1355_s30, %s972_s8 }
  0x18   : > { %v256_v4 = vmul.f32 %v1118_v3, %v1118_v3  ;;  %v1131_v8 = vld [vmem:[%s1104_s28 + $0x28] sm:$0xff]  ;;  %v1142_v11 = vld [vmem:[%s1104_s28 + $0x30] sm:$0xff]  ;;  %v234_v15 = vmul.f32 %v1134_v9, %v1134_v9  ;;  %868 = vmatprep.subr.mxu1 %v406_v17  ;;  %825 = vmatpush3.msra.mxu0 %v764_v16  ;;  %v259_v20 = vmul.f32 %v1139_v10, %v1139_v10  ;;  %v404_v23 = vld [vmem:[%s1402_s1 + $0x60] sm:$0xff] }
  0x19   : > { %v258_v14 = vmul.f32 %v1131_v8, %v1131_v8  ;;  %869 = vmatpush3.msra.mxu1 %v406_v17  ;;  %v235_v21 = vmul.f32 %v1142_v11, %v1142_v11  ;;  %826 = vmatprep.subr.mxu0 %v763_v18  ;;  %v403_v25 = vld [vmem:[%s1402_s1 + $0x58] sm:$0xff]  ;;  %v1185_v26 = vld [vmem:[%s1104_s28 + $0x48] sm:$0xff]  ;;  %v1188_v27 = vld [vmem:[%s1104_s28 + $0x40] sm:$0xff] }
  0x1a   : > { %870 = vmatprep.subr.mxu1 %v405_v19  ;;  %827 = vmatpush3.msra.mxu0 %v763_v18  ;;  %v402_v29 = vld [vmem:[%s1402_s1 + $0x50] sm:$0xff]  ;;  %v759_v30 = vld [vmem:[%s1402_s1 + $0xc8] sm:$0xff]  ;;  %v1205_v32 = vld [vmem:[%s1104_s28 + $0x58] sm:$0xff]  ;;  %v260_v36 = vmul.f32 %v1185_v26, %v1185_v26  ;;  %v236_v37 = vmul.f32 %v1188_v27, %v1188_v27 }
  0x1b   : > { %210 = vadd.xlane.f32.xlu1 %v1115_v2  ;;  %208 = vadd.xlane.f32.xlu0 %v1118_v3  ;;  %v401_v31 = vld [vmem:[%s1402_s1 + $0x48] sm:$0xff]  ;;  %v1208_v33 = vld [vmem:[%s1104_s28 + $0x50] sm:$0xff]  ;;  %v758_v34 = vld [vmem:[%s1402_s1 + $0xc0] sm:$0xff]  ;;  %v261_v40 = vmul.f32 %v1205_v32, %v1205_v32 }
  0x1c   : > { %871 = vmatpush3.msra.mxu1 %v405_v19  ;;  %828 = vmatprep.subr.mxu0 %v762_v22  ;;  %v400_v35 = vld [vmem:[%s1402_s1 + $0x40] sm:$0xff]  ;;  %v757_v38 = vld [vmem:[%s1402_s1 + $0xb8] sm:$0xff]  ;;  %v237_v41 = vmul.f32 %v1208_v33, %v1208_v33  ;;  %v756_v42 = vld [vmem:[%s1402_s1 + $0xb0] sm:$0xff] }
  0x1d   : > { %872 = vmatprep.subr.mxu1 %v404_v23  ;;  %829 = vmatpush3.msra.mxu0 %v762_v22  ;;  %v399_v39 = vld [vmem:[%s1402_s1 + $0x38] sm:$0xff]  ;;  %v398_v43 = vld [vmem:[%s1402_s1 + $0x30] sm:$0xff]  ;;  %v755_v44 = vld [vmem:[%s1402_s1 + $0xa8] sm:$0xff] }
  0x1e   : > { %873 = vmatpush3.msra.mxu1 %v404_v23  ;;  %830 = vmatprep.subr.mxu0 %v761_v24  ;;  %v397_v45 = vld [vmem:[%s1402_s1 + $0x28] sm:$0xff]  ;;  %v1248_v47 = vld [vmem:[%s1104_s28 + $0x60] sm:$0xff]  ;;  %v753_v50 = vld [vmem:[%s1402_s1 + $0x98] sm:$0xff] }
  0x1f   : > { %264 = vadd.xlane.f32.xlu1 %v256_v4  ;;  %240 = vadd.xlane.f32.xlu0 %v232_v5  ;;  %v1245_v46 = vld [vmem:[%s1104_s28 + $0x68] sm:$0xff]  ;;  %v754_v48 = vld [vmem:[%s1402_s1 + $0xa0] sm:$0xff]  ;;  %v395_v51 = vld [vmem:[%s1402_s1 + $0x18] sm:$0xff]  ;;  %v238_v57 = vmul.f32 %v1248_v47, %v1248_v47 }
  0x20   : > { %874 = vmatprep.subr.mxu1 %v403_v25  ;;  %831 = vmatpush3.msra.mxu0 %v761_v24  ;;  %v396_v49 = vld [vmem:[%s1402_s1 + $0x20] sm:$0xff]  ;;  %v1265_v52 = vld [vmem:[%s1104_s28 + $0x78] sm:$0xff]  ;;  %v1268_v53 = vld [vmem:[%s1104_s28 + $0x70] sm:$0xff]  ;;  %v262_v56 = vmul.f32 %v1245_v46, %v1245_v46  ;;  %s967_s28 = scalar_lea.vmem %s1355_s30, 1024 }
  0x21   : > { %875 = vmatpush3.msra.mxu1 %v403_v25  ;;  %832 = vmatprep.subr.mxu0 %v760_v28  ;;  %v752_v54 = vld [vmem:[%s1402_s1 + $0x90] sm:$0xff]  ;;  %v751_v58 = vld [vmem:[%s1402_s1 + $0x88] sm:$0xff]  ;;  %v263_v60 = vmul.f32 %v1265_v52, %v1265_v52  ;;  %v239_v61 = vmul.f32 %v1268_v53, %v1268_v53  ;;  %v750_v62 = vld [vmem:[%s1402_s1 + $0x80] sm:$0xff]  ;;  %p968_p11 = scmp.ne.s32.totalorder %s1355_s30, %s967_s28  ;;  %p975_p1 = scmp.lt.s32.totalorder %s973_s9, %s967_s28 }
  0x22   : > { %876 = vmatprep.subr.mxu1 %v402_v29  ;;  %833 = vmatpush3.msra.mxu0 %v760_v28  ;;  %v394_v55 = vld [vmem:[%s1402_s1 + $0x10] sm:$0xff]  ;;  %v393_v59 = vld [vmem:[%s1402_s1 + $0x8] sm:$0xff]  ;;  %v392_v63 = vld [vmem:[%s1402_s1] sm:$0xff] }
  0x23   : > { %266 = vadd.xlane.f32.xlu1 %v257_v6  ;;  %242 = vadd.xlane.f32.xlu0 %v233_v7  ;;  %p969_p12 = pnand %p968_p11, %p1090_p5  ;;  %p976_p2 = por %p975_p1, %p974_p0 }
  0x24   : > { %877 = vmatpush3.msra.mxu1 %v402_v29  ;;  %834 = vmatprep.subr.mxu0 %v759_v30 }
  0x25   : > { %878 = vmatprep.subr.mxu1 %v401_v31  ;;  %835 = vmatpush3.msra.mxu0 %v759_v30  ;;  %p970_p13 = pneg %p969_p12 }
  0x26   : > { %879 = vmatpush3.msra.mxu1 %v401_v31  ;;  %836 = vmatprep.subr.mxu0 %v758_v34 }
  0x27   : > { %212 = vadd.xlane.f32.xlu1 %v1131_v8  ;;  %196 = vadd.xlane.f32.xlu0 %v1134_v9  ;;  %p977_p3 = pnand %p976_p2, %p970_p13 }
  0x28   : > { %880 = vmatprep.subr.mxu1 %v400_v35  ;;  %837 = vmatpush3.msra.mxu0 %v758_v34 }
  0x29   : > { %881 = vmatpush3.msra.mxu1 %v400_v35  ;;  %838 = vmatprep.subr.mxu0 %v757_v38 }
  0x2a   : > { %882 = vmatprep.subr.mxu1 %v399_v39  ;;  %839 = vmatpush3.msra.mxu0 %v757_v38 }
  0x2b   : > { %214 = vadd.xlane.f32.xlu1 %v1139_v10  ;;  %198 = vadd.xlane.f32.xlu0 %v1142_v11 }
  0x2c   : > { %883 = vmatpush3.msra.mxu1 %v399_v39  ;;  %840 = vmatprep.subr.mxu0 %v756_v42 }
  0x2d   : > { %884 = vmatprep.subr.mxu1 %v398_v43  ;;  %841 = vmatpush3.msra.mxu0 %v756_v42 }
  0x2e   : > { %885 = vmatpush3.msra.mxu1 %v398_v43  ;;  %842 = vmatprep.subr.mxu0 %v755_v44 }
  0x2f   : > { %268 = vadd.xlane.f32.xlu1 %v258_v14  ;;  %244 = vadd.xlane.f32.xlu0 %v234_v15 }
  0x30   : > { %886 = vmatprep.subr.mxu1 %v397_v45  ;;  %843 = vmatpush3.msra.mxu0 %v755_v44 }
  0x31   : > { %887 = vmatpush3.msra.mxu1 %v397_v45  ;;  %844 = vmatprep.subr.mxu0 %v754_v48 }
  0x32   : > { %888 = vmatprep.subr.mxu1 %v396_v49  ;;  %845 = vmatpush3.msra.mxu0 %v754_v48 }
  0x33   : > { %270 = vadd.xlane.f32.xlu1 %v259_v20  ;;  %246 = vadd.xlane.f32.xlu0 %v235_v21 }
  0x34   : > { %889 = vmatpush3.msra.mxu1 %v396_v49  ;;  %846 = vmatprep.subr.mxu0 %v753_v50 }
  0x35   : > { %890 = vmatprep.subr.mxu1 %v395_v51  ;;  %847 = vmatpush3.msra.mxu0 %v753_v50 }
  0x36   : > { %891 = vmatpush3.msra.mxu1 %v395_v51  ;;  %848 = vmatprep.subr.mxu0 %v752_v54 }
  0x37   : > { %216 = vadd.xlane.f32.xlu1 %v1185_v26  ;;  %200 = vadd.xlane.f32.xlu0 %v1188_v27 }
  0x38   : > { %892 = vmatprep.subr.mxu1 %v394_v55  ;;  %849 = vmatpush3.msra.mxu0 %v752_v54 }
  0x39   : > { %893 = vmatpush3.msra.mxu1 %v394_v55  ;;  %850 = vmatprep.subr.mxu0 %v751_v58 }
  0x3a   : > { %894 = vmatprep.subr.mxu1 %v393_v59  ;;  %851 = vmatpush3.msra.mxu0 %v751_v58 }
  0x3b   : > { %218 = vadd.xlane.f32.xlu1 %v1205_v32  ;;  %202 = vadd.xlane.f32.xlu0 %v1208_v33 }
  0x3c   : > { %895 = vmatpush3.msra.mxu1 %v393_v59  ;;  %852 = vmatprep.subr.mxu0 %v750_v62 }
  0x3d   : > { %896 = vmatprep.subr.mxu1 %v392_v63  ;;  %853 = vmatpush3.msra.mxu0 %v750_v62 }
  0x3e   : > { %897 = vmatpush3.msra.mxu1 %v392_v63 }
  0x3f   : > { %272 = vadd.xlane.f32.xlu1 %v260_v36  ;;  %248 = vadd.xlane.f32.xlu0 %v236_v37 }
  0x43   : > { %274 = vadd.xlane.f32.xlu1 %v261_v40  ;;  %250 = vadd.xlane.f32.xlu0 %v237_v41 }
  0x47   : > { %220 = vadd.xlane.f32.xlu1 %v1245_v46  ;;  %204 = vadd.xlane.f32.xlu0 %v1248_v47 }
  0x4b   : > { %222 = vadd.xlane.f32.xlu1 %v1265_v52  ;;  %206 = vadd.xlane.f32.xlu0 %v1268_v53 }
  0x4f   : > { %276 = vadd.xlane.f32.xlu1 %v262_v56  ;;  %252 = vadd.xlane.f32.xlu0 %v238_v57 }
  0x53   : > { %278 = vadd.xlane.f32.xlu1 %v263_v60  ;;  %254 = vadd.xlane.f32.xlu0 %v239_v61 }
  0xa0   : > { %v195_v4 = vpop.xlane.xlu1 %194  ;;  %v193_v5 = vpop.xlane.xlu0 %192 }
  0xa4   : > { %v211_v6 = vpop.xlane.xlu1 %210  ;;  %v209_v7 = vpop.xlane.xlu0 %208 }
  0xa5   : > { %v224_v12 = vadd.f32 %v209_v7, %v193_v5  ;;  %v225_v13 = vadd.f32 %v211_v6, %v195_v4 }
  0xa7   : > { %v288_v14 = vmul.f32 0.00390625, %v224_v12  ;;  %v289_v18 = vmul.f32 0.00390625, %v225_v13 }
  0xa8   : > { %v265_v15 = vpop.xlane.xlu1 %264  ;;  %v241_v16 = vpop.xlane.xlu0 %240 }
  0xa9   : > { %v280_v17 = vadd.f32 %v265_v15, %v241_v16  ;;  %v304_v19 = vmul.f32 %v288_v14, %v288_v14  ;;  %v305_v25 = vmul.f32 %v289_v18, %v289_v18  ;;  %v344_v60 = vsub.f32 0.0, %v288_v14 }
  0xab   : > { %v296_v20 = vmul.f32 0.00390625, %v280_v17  ;;  %v345_v17 = vsub.f32 0.0, %v289_v18 }
  0xac   : > { %v267_v21 = vpop.xlane.xlu1 %266  ;;  %v243_v22 = vpop.xlane.xlu0 %242 }
  0xad   : > { %v281_v23 = vadd.f32 %v267_v21, %v243_v22  ;;  %v312_v24 = vsub.f32 %v296_v20, %v304_v19 }
  0xaf   : > { %v297_v28 = vmul.f32 0.00390625, %v281_v23  ;;  %v320_v29 = vmax.f32 %v312_v24, 0.0 }
  0xb0   : > { %v213_v30 = vpop.xlane.xlu1 %212  ;;  %v197_v31 = vpop.xlane.xlu0 %196 }
  0xb1   : > { %v313_v34 = vsub.f32 %v297_v28, %v305_v25  ;;  %v328_v35 = vadd.f32 1e-05, %v320_v29  ;;  %v226_v37 = vadd.f32 %v213_v30, %v197_v31 }
  0xb3   : > { %v321_v36 = vmax.f32 %v313_v34, 0.0  ;;  %951 = vrsqrt.f32 %v328_v35  ;;  %v1298_v41 = vmul.f32 0.00390625, %v226_v37 }
  0xb4   : > { %v215_v38 = vpop.xlane.xlu1 %214  ;;  %v199_v39 = vpop.xlane.xlu0 %198 }
  0xb5   : > { %v329_v40 = vadd.f32 1e-05, %v321_v36  ;;  %v227_v42 = vadd.f32 %v215_v38, %v199_v39  ;;  %v306_v48 = vmul.f32 %v1298_v41, %v1298_v41  ;;  %v346_v39 = vsub.f32 0.0, %v1298_v41 }
  0xb7   : > { %953 = vrsqrt.f32 %v329_v40  ;;  %v1302_v49 = vmul.f32 0.00390625, %v227_v42 }
  0xb8   : > { %v269_v43 = vpop.xlane.xlu1 %268  ;;  %v245_v44 = vpop.xlane.xlu0 %244 }
  0xb9   : > { %v282_v45 = vadd.f32 %v269_v43, %v245_v44  ;;  %v307_v57 = vmul.f32 %v1302_v49, %v1302_v49  ;;  %v347_v41 = vsub.f32 0.0, %v1302_v49 }
  0xbb   : > { %v298_v50 = vmul.f32 0.00390625, %v282_v45 }
  0xbc   : > { %v271_v51 = vpop.xlane.xlu1 %270  ;;  %v247_v54 = vpop.xlane.xlu0 %246 }
  0xbd   : > { %v314_v55 = vsub.f32 %v298_v50, %v306_v48  ;;  %v283_v56 = vadd.f32 %v271_v51, %v247_v54 }
  0xbf   : > { %v322_v58 = vmax.f32 %v314_v55, 0.0  ;;  %v299_v59 = vmul.f32 0.00390625, %v283_v56 }
  0xc0   : > { %v217_v61 = vpop.xlane.xlu1 %216  ;;  %v201_v62 = vpop.xlane.xlu0 %200 }
  0xc1   : > { %v952_v63 = vpop.eup %951  ;;  %v330_v4 = vadd.f32 1e-05, %v322_v58  ;;  %v315_v5 = vsub.f32 %v299_v59, %v307_v57  ;;  %v228_v15 = vadd.f32 %v217_v61, %v201_v62 }
  0xc2   : > { %v352_v6 = vmul.f32 %v952_v63, %v344_v60  ;;  %v376_v7 = vmul.f32 %v952_v63, %v1118_v3  ;;  %v360_v12 = vmul.f32 %v952_v63, %v1110_v1 }
  0xc3   : > { %955 = vrsqrt.f32 %v330_v4  ;;  %v323_v13 = vmax.f32 %v315_v5, 0.0  ;;  %v1310_v3 = vmul.f32 0.00390625, %v228_v15 }
  0xc4   : > { %v954_v16 = vpop.eup %953  ;;  %v219_v19 = vpop.xlane.xlu1 %218  ;;  %v384_v21 = vadd.f32 %v376_v7, %v352_v6  ;;  %v368_v22 = vadd.f32 %v360_v12, %v352_v6 }
  0xc5   : > { %v203_v20 = vpop.xlane.xlu0 %202  ;;  %v331_v14 = vadd.f32 1e-05, %v323_v13  ;;  %v353_v23 = vmul.f32 %v954_v16, %v345_v17  ;;  %v377_v24 = vmul.f32 %v954_v16, %v1115_v2  ;;  %v361_v25 = vmul.f32 %v954_v16, %v1107_v0 }
  0xc6   : > { %854 = vmatprep.mubr.f32.mxu0 %v384_v21  ;;  %898 = vmatprep.mubr.f32.mxu1 %v368_v22  ;;  %v229_v1 = vadd.f32 %v219_v19, %v203_v20  ;;  %v308_v34 = vmul.f32 %v1310_v3, %v1310_v3 }
  0xc7   : > { %957 = vrsqrt.f32 %v331_v14  ;;  %v385_v30 = vadd.f32 %v377_v24, %v353_v23  ;;  %v369_v18 = vadd.f32 %v361_v25, %v353_v23 }
  0xc8   : > { %v273_v28 = vpop.xlane.xlu1 %272  ;;  %v1314_v35 = vmul.f32 0.00390625, %v229_v1 }
  0xc9   : > { %v249_v29 = vpop.xlane.xlu0 %248  ;;  %855 = vmatmul.mubr.f32.vlgmr.msra.gmra.mxu0 %v385_v30  ;;  %899 = vmatmul.mubr.f32.vlgmr.msra.gmra.mxu1 %v369_v18 }
  0xca   : > { %v284_v31 = vadd.f32 %v273_v28, %v249_v29  ;;  %v309_v40 = vmul.f32 %v1314_v35, %v1314_v35 }
  0xcc   : > { %v300_v36 = vmul.f32 0.00390625, %v284_v31  ;;  %v275_v2 = vpop.xlane.xlu1 %274 }
  0xcd   : > { %v251_v37 = vpop.xlane.xlu0 %250 }
  0xce   : > { %v316_v0 = vsub.f32 %v300_v36, %v308_v34  ;;  %v285_v38 = vadd.f32 %v275_v2, %v251_v37  ;;  %v349_v34 = vsub.f32 0.0, %v1314_v35 }
  0xd0   : > { %v324_v42 = vmax.f32 %v316_v0, 0.0  ;;  %v301_v43 = vmul.f32 0.00390625, %v285_v38  ;;  %v956_v44 = vpop.eup %955  ;;  %v221_v45 = vpop.xlane.xlu1 %220 }
  0xd1   : > { %v205_v48 = vpop.xlane.xlu0 %204  ;;  %v354_v54 = vmul.f32 %v956_v44, %v346_v39  ;;  %v378_v55 = vmul.f32 %v956_v44, %v1131_v8  ;;  %v362_v56 = vmul.f32 %v956_v44, %v1134_v9 }
  0xd2   : > { %v332_v50 = vadd.f32 1e-05, %v324_v42  ;;  %v317_v51 = vsub.f32 %v301_v43, %v309_v40  ;;  %v230_v58 = vadd.f32 %v221_v45, %v205_v48 }
  0xd3   : > { %v386_v62 = vadd.f32 %v378_v55, %v354_v54  ;;  %v370_v63 = vadd.f32 %v362_v56, %v354_v54 }
  0xd4   : > { %959 = vrsqrt.f32 %v332_v50  ;;  %v325_v57 = vmax.f32 %v317_v51, 0.0  ;;  %v958_v59 = vpop.eup %957  ;;  %v223_v60 = vpop.xlane.xlu1 %222  ;;  %v294_v9 = vmul.f32 0.00390625, %v230_v58  ;;  %v766_v58 = vld [vmem:[%s1403_s2] ss:$0 sm:$0xff] }
  0xd5   : > { %v207_v61 = vpop.xlane.xlu0 %206  ;;  %857 = vmatprep.mubr.f32.mxu0 %v386_v62  ;;  %901 = vmatprep.mubr.f32.mxu1 %v370_v63  ;;  %v355_v5 = vmul.f32 %v958_v59, %v347_v41  ;;  %v379_v6 = vmul.f32 %v958_v59, %v1139_v10  ;;  %v363_v8 = vmul.f32 %v958_v59, %v1142_v11  ;;  %v348_v10 = vsub.f32 0.0, %v1310_v3 }
  0xd6   : > { %v333_v4 = vadd.f32 1e-05, %v325_v57  ;;  %v231_v7 = vadd.f32 %v223_v60, %v207_v61  ;;  %v310_v17 = vmul.f32 %v294_v9, %v294_v9 }
  0xd7   : > { %v387_v15 = vadd.f32 %v379_v6, %v355_v5  ;;  %v371_v16 = vadd.f32 %v363_v8, %v355_v5 }
  0xd8   : > { %961 = vrsqrt.f32 %v333_v4  ;;  %v277_v12 = vpop.xlane.xlu1 %276  ;;  %v295_v19 = vmul.f32 0.00390625, %v231_v7 }
  0xd9   : > { %v253_v13 = vpop.xlane.xlu0 %252  ;;  %858 = vmatmul.mubr.f32.gmra.mxu0 %v387_v15  ;;  %902 = vmatmul.mubr.f32.gmra.mxu1 %v371_v16 }
  0xda   : > { %v286_v49 = vadd.f32 %v277_v12, %v253_v13  ;;  %v311_v11 = vmul.f32 %v295_v19, %v295_v19  ;;  %v351_v48 = vsub.f32 0.0, %v295_v19 }
  0xdc   : > { %v302_v20 = vmul.f32 0.00390625, %v286_v49  ;;  %v279_v21 = vpop.xlane.xlu1 %278 }
  0xdd   : > { %v255_v22 = vpop.xlane.xlu0 %254 }
  0xde   : > { %v318_v14 = vsub.f32 %v302_v20, %v310_v17  ;;  %v287_v23 = vadd.f32 %v279_v21, %v255_v22 }
  0xe0   : > { %v326_v24 = vmax.f32 %v318_v14, 0.0  ;;  %v303_v25 = vmul.f32 0.00390625, %v287_v23 }
  0xe1   : > { %v960_v1 = vpop.eup %959 }
  0xe2   : > { %v334_v28 = vadd.f32 1e-05, %v326_v24  ;;  %v319_v29 = vsub.f32 %v303_v25, %v311_v11  ;;  %v356_v30 = vmul.f32 %v960_v1, %v348_v10  ;;  %v380_v18 = vmul.f32 %v960_v1, %v1185_v26 }
  0xe3   : > { %v364_v31 = vmul.f32 %v960_v1, %v1188_v27  ;;  %v350_v27 = vsub.f32 0.0, %v294_v9 }
  0xe4   : > { %963 = vrsqrt.f32 %v334_v28  ;;  %v327_v36 = vmax.f32 %v319_v29, 0.0  ;;  %v388_v2 = vadd.f32 %v380_v18, %v356_v30 }
  0xe5   : > { %v962_v37 = vpop.eup %961  ;;  %v372_v0 = vadd.f32 %v364_v31, %v356_v30 }
  0xe6   : > { %v335_v38 = vadd.f32 1e-05, %v327_v36  ;;  %860 = vmatprep.mubr.f32.mxu0 %v388_v2  ;;  %v357_v3 = vmul.f32 %v962_v37, %v349_v34  ;;  %v381_v39 = vmul.f32 %v962_v37, %v1205_v32  ;;  %v365_v40 = vmul.f32 %v962_v37, %v1208_v33 }
  0xe7   : > { %904 = vmatprep.mubr.f32.mxu1 %v372_v0 }
  0xe8   : > { %965 = vrsqrt.f32 %v335_v38  ;;  %v389_v42 = vadd.f32 %v381_v39, %v357_v3  ;;  %v373_v26 = vadd.f32 %v365_v40, %v357_v3 }
  0xea   : > { %861 = vmatmul.mubr.f32.gmra.mxu0 %v389_v42  ;;  %905 = vmatmul.mubr.f32.gmra.mxu1 %v373_v26 }
  0xf1   : > { %v964_v35 = vpop.eup %963 }
  0xf2   : > { %v358_v43 = vmul.f32 %v964_v35, %v350_v27  ;;  %v382_v44 = vmul.f32 %v964_v35, %v1245_v46  ;;  %v366_v45 = vmul.f32 %v964_v35, %v1248_v47 }
  0xf4   : > { %v390_v50 = vadd.f32 %v382_v44, %v358_v43  ;;  %v374_v32 = vadd.f32 %v366_v45, %v358_v43 }
  0xf5   : > { %v966_v51 = vpop.eup %965 }
  0xf6   : > { %863 = vmatprep.mubr.f32.mxu0 %v390_v50  ;;  %907 = vmatprep.mubr.f32.mxu1 %v374_v32  ;;  %v359_v33 = vmul.f32 %v966_v51, %v351_v48  ;;  %v383_v54 = vmul.f32 %v966_v51, %v1265_v52  ;;  %v367_v55 = vmul.f32 %v966_v51, %v1268_v53 }
  0xf8   : > { %v391_v56 = vadd.f32 %v383_v54, %v359_v33  ;;  %v375_v57 = vadd.f32 %v367_v55, %v359_v33 }
  0xfa   : > { %864 = vmatmul.mubr.f32.gmra.mxu0 %v391_v56  ;;  %908 = vmatmul.mubr.f32.gmra.mxu1 %v375_v57 }
 0x189   : > { %v856_v46 = vpop.f32.mrf.mxu0  ;;  %v900_v47 = vpop.f32.mrf.mxu1 }
 0x18a   : > { %v602_v59 = vadd.f32 %v900_v47, %v856_v46 }
 0x18b   : > { %v491_v41 = vpop.f32.mrf.mxu0  ;;  %v596_v60 = vpop.f32.mrf.mxu1 }
 0x18c   : > { %v643_v61 = vadd.f32 %v766_v58, %v602_v59  ;;  %v597_v52 = vadd.f32 %v596_v60, %v491_v41 }
 0x18e   : > { %651 = vst [vmem:[%s1340_s27 + $0x8] sm:$0xff] %v643_v61  ;;  %v642_v53 = vadd.f32 %v766_v58, %v597_v52 }
 0x190   : > { %650 = vst [vmem:[%s1340_s27] sm:$0xff] %v642_v53 }
 0x199   : > { %v859_v62 = vpop.f32.mrf.mxu0  ;;  %v903_v63 = vpop.f32.mrf.mxu1 }
 0x19a   : > { %v612_v4 = vadd.f32 %v903_v63, %v859_v62 }
 0x19b   : > { %v501_v5 = vpop.f32.mrf.mxu0  ;;  %v606_v6 = vpop.f32.mrf.mxu1 }
 0x19c   : > { %v645_v8 = vadd.f32 %v766_v58, %v612_v4  ;;  %v607_v9 = vadd.f32 %v606_v6, %v501_v5 }
 0x19e   : > { %653 = vst [vmem:[%s1340_s27 + $0x18] sm:$0xff] %v645_v8  ;;  %v644_v7 = vadd.f32 %v766_v58, %v607_v9 }
 0x1a0   : > { %652 = vst [vmem:[%s1340_s27 + $0x10] sm:$0xff] %v644_v7 }
 0x1aa   : > { %v862_v12 = vpop.f32.mrf.mxu0  ;;  %v906_v13 = vpop.f32.mrf.mxu1 }
 0x1ab   : > { %v622_v15 = vadd.f32 %v906_v13, %v862_v12 }
 0x1ac   : > { %v511_v16 = vpop.f32.mrf.mxu0  ;;  %v616_v49 = vpop.f32.mrf.mxu1 }
 0x1ad   : > { %v647_v17 = vadd.f32 %v766_v58, %v622_v15  ;;  %v617_v19 = vadd.f32 %v616_v49, %v511_v16 }
 0x1af   : > { %655 = vst [vmem:[%s1340_s27 + $0x28] sm:$0xff] %v647_v17  ;;  %v646_v20 = vadd.f32 %v766_v58, %v617_v19 }
 0x1b1   : > { %654 = vst [vmem:[%s1340_s27 + $0x20] sm:$0xff] %v646_v20 }
 0x1ba   : > { %v865_v21 = vpop.f32.mrf.mxu0  ;;  %v909_v22 = vpop.f32.mrf.mxu1 }
 0x1bb   : > { %v632_v14 = vadd.f32 %v909_v22, %v865_v21 }
 0x1bc   : > { %v521_v23 = vpop.f32.mrf.mxu0  ;;  %v626_v10 = vpop.f32.mrf.mxu1 }
 0x1bd   : > { %v649_v11 = vadd.f32 %v766_v58, %v632_v14  ;;  %v627_v24 = vadd.f32 %v626_v10, %v521_v23 }
 0x1bf   : > { %657 = vst [vmem:[%s1340_s27 + $0x38] sm:$0xff] %v649_v11  ;;  %v648_v25 = vadd.f32 %v766_v58, %v627_v24 }
 0x1c1   : > { %656 = vst [vmem:[%s1340_s27 + $0x30] sm:$0xff] %v648_v25 }
 0x1c2   : > { %980 = shalt.err (!%p977_p3)
}
 0x1c3   : > { %s981_s10 = scalar_lea.hbm %s1353_s6, 1024  ;;  %s985_s19 = scalar_lea.hbm %s1404_s3, 2048 }
 0x1c4   : > { %p982_p4 = scmp.ne.s32.totalorder %s1353_s6, %s981_s10  ;;  %p986_p9 = scmp.lt.s32.totalorder %s1353_s6, %s1404_s3 }
 0x1c5   : > { %p987_p10 = scmp.lt.s32.totalorder %s985_s19, %s981_s10 }
 0x1c6   : > { %p983_p7 = pnand %p982_p4, %p1090_p5 }
 0x1c7   : > { %p988_p11 = por %p987_p10, %p986_p9 }
 0x1c8   : > { %p984_p8 = pneg %p983_p7 }
 0x1ca   : > { %p989_p12 = pnand %p988_p11, %p984_p8 }
 0x1cc   : > { %992 = shalt.err (!%p989_p12)
}
 0x1cd   : > { %s1030_s25 = smov 128   ;;  %s1031_s26 = smov 8  }
 0x1ce   : > { %910 = dma.vmem_to_hbm [thread:$0]  (%p1090_p5), %s1355_s30, 1024, %s1353_s6, %s1361_s16, %s1030_s25, %s1030_s25, %s1031_s26  }
 0x1cf PF: > { %p916_p13 = scmp.ge.s32.totalorder %s1027_s15, 2  ;;  %s687_s27 = sand.u32 1, %s1015_s12  }
 0x1d0   : > { %s688_s29 = scalar_lea.sflag [#allocation3], %s687_s27 }
 0x1d1   : > { %p913_p0 = pnand %p916_p13, %p1094_p6 }
 0x1d3   : > { %p914_p1 = pneg %p913_p0 }
 0x1d5   : > { %1010 = dma.done.wait (%p914_p1), %s688_s29, 1024  }
 0x1d6   : > { %1012 = vsyncadd (%p914_p1), %s688_s29, 4294966272  ;;  %p13_p2 = scmp.ge.s32.totalorder %s1077_s18, 4   ;;  %s1407_s12 = smov %s1019_s13 }
 0x1d7   : > { %s1408_s13 = smov %s1023_s14  ;;  %s1409_s14 = smov %s1088_s21 }
 0x1d8   : > { %s1410_s15 = smov %s1077_s18  ;;  %15 = sbr.rel (!%p13_p2) target bundleno = 3 (0x3), region = 69 }
 0x1dd   :  { %693 = vsyncpa [#allocation3], 1 }
 0x1de   :  { %695 = vsyncpa [#allocation3 + $0x1], 1 }

</bundles_post_ra>
